<compile_context>
chip_gen: v7x
topology: tpu7x:2x2x1
jax: 0.10.0
libtpu: 0.0.40
codegen_flags: <defaults>
</compile_context>

<pallas_src>
import functools

import numpy as np
import jax
import jax.numpy as jnp
from jax.experimental import pallas as pl
from jax.experimental.pallas import tpu as pltpu


def _pixel_unshuffle_kernel(x_ref, q_ref, o_ref, *, r, ct, H, W):
    # x_ref: (1, ct*H, r*r*W)   rows ordered (c, h); cols ordered (dy, w, dx)
    # q_ref: (r*r*W, r*r*W)     one-hot column permutation: dest (dy, dx, w) <- src (dy, w, dx)
    # o_ref: (1, ct, r*r, H, W)
    x = x_ref[0]                                                     # (ct*H, r*r*W)

    # Exact lane permutation on the MXU: z[i, k] = x[i, src_col(k)].
    z = jnp.dot(x, q_ref[...], preferred_element_type=jnp.float32)   # cols (dy, dx, w)

    for k in range(r * r):                                           # static unroll, r*r slices
        blk = z[:, k * W:(k + 1) * W]                                # (ct*H, W) contiguous lanes
        o_ref[0, :, k, :, :] = blk.reshape(ct, H, W).astype(o_ref.dtype)


def _pick_channel_tile(C, H, K, itemsize, budget_bytes=4 << 20):
    """Largest divisor of C whose input block fits the budget and keeps 8-aligned rows."""
    for d in range(C, 0, -1):
        if C % d:
            continue
        layout_ok = (d == C) or ((d * H) % 8 == 0)
        if layout_ok and d * H * K * itemsize <= budget_bytes:
            return d
    return C  # fallback: no channel tiling (always correct)


def pixel_unshuffle(x, upscale_factor):
    """Pallas TPU pixel_unshuffle. x: (B, C, r*H, r*W) NCHW -> (B, C*r*r, H, W)."""
    r = int(upscale_factor)
    B, C, rH, rW = x.shape
    assert rH % r == 0 and rW % r == 0, "spatial dims must be divisible by upscale_factor"
    H, W = rH // r, rW // r
    K = r * r * W

    orig_dtype = x.dtype
    if not jnp.issubdtype(orig_dtype, jnp.floating):
        # One-hot matmul needs a float path; exact for integer magnitudes < 2^24.
        x = x.astype(jnp.float32)

    # Wrapper-side layout plumbing only (row-major flatten; no data movement).
    x_r = x.reshape(B, C * H, K)                 # rows (c, h); cols (dy, w, dx)

    # One-hot column-permutation matrix (exact 0/1 values).
    k = np.arange(K)
    dy_idx = k // (r * W)
    rem = k % (r * W)
    dx_idx, w_idx = rem // W, rem % W
    src_col = dy_idx * (W * r) + w_idx * r + dx_idx        # dest (dy,dx,w) <- src (dy,w,dx)
    q_np = np.zeros((K, K), np.float32)
    q_np[src_col, k] = 1.0
    q = jnp.asarray(q_np, dtype=x.dtype)

    ct = _pick_channel_tile(C, H, K, x.dtype.itemsize)

    kernel = functools.partial(_pixel_unshuffle_kernel, r=r, ct=ct, H=H, W=W)
    out = pl.pallas_call(
        kernel,
        out_shape=jax.ShapeDtypeStruct((B, C, r * r, H, W), x.dtype),
        grid_spec=pltpu.PrefetchScalarGridSpec(
            num_scalar_prefetch=0,
            grid=(B, C // ct),
            in_specs=[
                pl.BlockSpec((1, ct * H, K), lambda b, ci: (b, ci, 0)),
                pl.BlockSpec((K, K), lambda b, ci: (0, 0)),
            ],
            out_specs=pl.BlockSpec((1, ct, r * r, H, W),
                                   lambda b, ci: (b, ci, 0, 0, 0)),
        ),
        compiler_params=pltpu.CompilerParams(
            dimension_semantics=("parallel", "parallel")),
    )(x_r, q)

    # Free reshape: (B, C, r*r, H, W) -> (B, C*r*r, H, W); channel = c*r^2 + dy*r + dx.
    out = out.reshape(B, C * r * r, H, W)
    return out.astype(orig_dtype)


def _reference(x, r):
    """Pure-JAX reference matching torch pixel_unshuffle semantics."""
    B, C, rH, rW = x.shape
    H, W = rH // r, rW // r
    xv = x.reshape(B, C, H, r, W, r)
    return jnp.transpose(xv, (0, 1, 3, 5, 2, 4)).reshape(B, C * r * r, H, W)


if __name__ == "__main__":
    # Small shapes consistent with the module: batch=2, channels=4, spatial=16, r=2.
    B, C, rH, rW, r = 2, 4, 16, 16, 2

    key = jax.random.PRNGKey(0)
    x = jax.random.normal(key, (B, C, rH, rW), jnp.float32)

    out = jax.block_until_ready(pixel_unshuffle(x, r))

    ref = _reference(x, r)
    assert out.shape == (B, C * r * r, rH // r, rW // r)
    assert bool(jnp.allclose(out, ref, atol=1e-6, rtol=1e-6)), "mismatch vs reference"

    print("KERNEL_OK")
</pallas_src>

<mosaic_0001>
module attributes {stable_mosaic.version = 11 : i64} {
  func.func @_pixel_unshuffle_kernel(%arg0: i32, %arg1: i32, %arg2: memref<1x32x32xf32, #tpu.memory_space<vmem>>, %arg3: memref<32x32xf32, #tpu.memory_space<vmem>>, %arg4: memref<1x4x4x8x8xf32, #tpu.memory_space<vmem>>) attributes {dimension_semantics = [#tpu.dimension_semantics<parallel>, #tpu.dimension_semantics<parallel>], iteration_bounds = array<i64: 2, 1>, scalar_prefetch = 0 : i64, scratch_operands = 0 : i64, tpu.core_type = #tpu.core_type<tc>, window_params = [{transform_indices = @transform_0, window_bounds = array<i64: 1, 32, 32>}, {pipeline_mode = #tpu.pipeline_mode<synchronous>, transform_indices = @transform_1, window_bounds = array<i64: 32, 32>}, {transform_indices = @transform_2, window_bounds = array<i64: 1, 4, 4, 8, 8>}]} {
    %c0 = arith.constant 0 : index
    %c0_0 = arith.constant 0 : index
    %c0_1 = arith.constant 0 : index
    %0 = vector.load %arg2[%c0, %c0_0, %c0_1] : memref<1x32x32xf32, #tpu.memory_space<vmem>>, vector<1x32x32xf32>
    %1 = vector.shape_cast %0 : vector<1x32x32xf32> to vector<32x32xf32>
    %c0_2 = arith.constant 0 : index
    %c0_3 = arith.constant 0 : index
    %2 = vector.load %arg3[%c0_2, %c0_3] : memref<32x32xf32, #tpu.memory_space<vmem>>, vector<32x32xf32>
    %cst = arith.constant dense<0.000000e+00> : vector<32x32xf32>
    %3 = tpu.matmul %1, %2, %cst {dimension_numbers = #tpu.dot_dimension_numbers<[1], [0], [0], [1], [0, 0, 1, 1], [], []>} : vector<32x32xf32>, vector<32x32xf32>, vector<32x32xf32> -> vector<32x32xf32>
    %4 = vector.extract_strided_slice %3 {offsets = [0, 0], sizes = [32, 8], strides = [1, 1]} : vector<32x32xf32> to vector<32x8xf32>
    %5 = vector.shape_cast %4 : vector<32x8xf32> to vector<4x8x8xf32>
    %c0_4 = arith.constant 0 : index
    %c0_5 = arith.constant 0 : index
    %c0_6 = arith.constant 0 : index
    %c0_7 = arith.constant 0 : index
    %c0_8 = arith.constant 0 : index
    %6 = vector.load %arg4[%c0_4, %c0_5, %c0_6, %c0_7, %c0_8] : memref<1x4x4x8x8xf32, #tpu.memory_space<vmem>>, vector<1x4x1x8x8xf32>
    %7 = vector.shape_cast %6 : vector<1x4x1x8x8xf32> to vector<4x8x8xf32>
    %8 = vector.shape_cast %5 : vector<4x8x8xf32> to vector<1x4x1x8x8xf32>
    tpu.vector_store %arg4[%c0_4, %c0_5, %c0_6, %c0_7, %c0_8], %8 {strides = array<i32>} : memref<1x4x4x8x8xf32, #tpu.memory_space<vmem>>, vector<1x4x1x8x8xf32>,
    %9 = vector.extract_strided_slice %3 {offsets = [0, 8], sizes = [32, 8], strides = [1, 1]} : vector<32x32xf32> to vector<32x8xf32>
    %10 = vector.shape_cast %9 : vector<32x8xf32> to vector<4x8x8xf32>
    %c0_9 = arith.constant 0 : index
    %c0_10 = arith.constant 0 : index
    %c1 = arith.constant 1 : index
    %c0_11 = arith.constant 0 : index
    %c0_12 = arith.constant 0 : index
    %11 = vector.load %arg4[%c0_9, %c0_10, %c1, %c0_11, %c0_12] : memref<1x4x4x8x8xf32, #tpu.memory_space<vmem>>, vector<1x4x1x8x8xf32>
    %12 = vector.shape_cast %11 : vector<1x4x1x8x8xf32> to vector<4x8x8xf32>
    %13 = vector.shape_cast %10 : vector<4x8x8xf32> to vector<1x4x1x8x8xf32>
    tpu.vector_store %arg4[%c0_9, %c0_10, %c1, %c0_11, %c0_12], %13 {strides = array<i32>} : memref<1x4x4x8x8xf32, #tpu.memory_space<vmem>>, vector<1x4x1x8x8xf32>,
    %14 = vector.extract_strided_slice %3 {offsets = [0, 16], sizes = [32, 8], strides = [1, 1]} : vector<32x32xf32> to vector<32x8xf32>
    %15 = vector.shape_cast %14 : vector<32x8xf32> to vector<4x8x8xf32>
    %c0_13 = arith.constant 0 : index
    %c0_14 = arith.constant 0 : index
    %c2 = arith.constant 2 : index
    %c0_15 = arith.constant 0 : index
    %c0_16 = arith.constant 0 : index
    %16 = vector.load %arg4[%c0_13, %c0_14, %c2, %c0_15, %c0_16] : memref<1x4x4x8x8xf32, #tpu.memory_space<vmem>>, vector<1x4x1x8x8xf32>
    %17 = vector.shape_cast %16 : vector<1x4x1x8x8xf32> to vector<4x8x8xf32>
    %18 = vector.shape_cast %15 : vector<4x8x8xf32> to vector<1x4x1x8x8xf32>
    tpu.vector_store %arg4[%c0_13, %c0_14, %c2, %c0_15, %c0_16], %18 {strides = array<i32>} : memref<1x4x4x8x8xf32, #tpu.memory_space<vmem>>, vector<1x4x1x8x8xf32>,
    %19 = vector.extract_strided_slice %3 {offsets = [0, 24], sizes = [32, 8], strides = [1, 1]} : vector<32x32xf32> to vector<32x8xf32>
    %20 = vector.shape_cast %19 : vector<32x8xf32> to vector<4x8x8xf32>
    %c0_17 = arith.constant 0 : index
    %c0_18 = arith.constant 0 : index
    %c3 = arith.constant 3 : index
    %c0_19 = arith.constant 0 : index
    %c0_20 = arith.constant 0 : index
    %21 = vector.load %arg4[%c0_17, %c0_18, %c3, %c0_19, %c0_20] : memref<1x4x4x8x8xf32, #tpu.memory_space<vmem>>, vector<1x4x1x8x8xf32>
    %22 = vector.shape_cast %21 : vector<1x4x1x8x8xf32> to vector<4x8x8xf32>
    %23 = vector.shape_cast %20 : vector<4x8x8xf32> to vector<1x4x1x8x8xf32>
    tpu.vector_store %arg4[%c0_17, %c0_18, %c3, %c0_19, %c0_20], %23 {strides = array<i32>} : memref<1x4x4x8x8xf32, #tpu.memory_space<vmem>>, vector<1x4x1x8x8xf32>,
    return
  }
  func.func @transform_0(%arg0: i32, %arg1: i32) -> (i32, i32, i32) {
    %c0_i32 = arith.constant 0 : i32
    %c0_i32_0 = arith.constant 0 : i32
    return %arg0, %arg1, %c0_i32 : i32, i32, i32
  }
  func.func @transform_1(%arg0: i32, %arg1: i32) -> (i32, i32) {
    %c0_i32 = arith.constant 0 : i32
    %c0_i32_0 = arith.constant 0 : i32
    %c0_i32_1 = arith.constant 0 : i32
    return %c0_i32, %c0_i32_0 : i32, i32
  }
  func.func @transform_2(%arg0: i32, %arg1: i32) -> (i32, i32, i32, i32, i32) {
    %c0_i32 = arith.constant 0 : i32
    %c0_i32_0 = arith.constant 0 : i32
    %c0_i32_1 = arith.constant 0 : i32
    %c0_i32_2 = arith.constant 0 : i32
    return %arg0, %arg1, %c0_i32, %c0_i32_0, %c0_i32_1 : i32, i32, i32, i32, i32
  }
}

</mosaic_0001>

<bundles_post_ra>
// kernel: tpu_custom_call.1
= control target key start
LH: loop header
LB: loop body
LE: loop exit
PB: predicated region body
PF: predicated region fallthrough
CT: control target
= control target key end

     0   :  { %7 = vsyncpa [#allocation3], 0  ;;  %s1062_s0 = inlined_call_operand.hbm [shape: f32[2,32,32], index: 0, kind: input, shape index: {}]   ;;  %s1063_s1 = inlined_call_operand.hbm [shape: f32[32,32], index: 1, kind: input, shape index: {}]   ;;  %s1064_s2 = inlined_call_operand.hbm [shape: f32[2,4,4,8,8], index: 2, kind: output, shape index: {}]  }
   0x1   :  { %9 = vsyncpa [#allocation3 + $0x1], 0 }
   0x2   :  { %10 = vsyncpa [#allocation6], 0 }
   0x3   :  { %11 = vsyncpa [#allocation4], 0 }
   0x4   :  { %13 = vsyncpa [#allocation4 + $0x1], 0  ;;  %s797_s9 = smov 0   ;;  %s799_s10 = smov 0  }
   0x5   :  { %s801_s11 = smov 0   ;;  %s803_s12 = smov 0  }
   0x6   :  { %s805_s13 = smov 0   ;;  %s807_s14 = smov 0  }
   0x7 LB: > { %s477_s15 = sadd.s32 4294967295, %s770_s14   ;;  %s478_s16 = sadd.s32 4294967294, %s770_s14   ;;  %s770_s14 = sphi %s807_s14, %s19_s14   ;;  %s766_s13 = sphi %s805_s13, %s1088_s13   ;;  %s762_s12 = sphi %s803_s12, %s1087_s12   ;;  %s758_s11 = sphi %s801_s11, %s1086_s11   ;;  %s754_s10 = sphi %s799_s10, %s1085_s10   ;;  %s750_s9 = sphi %s797_s9, %s1084_s9  }
   0x8   : > { %p53_p0 = scmp.ne.s32.totalorder %s754_s10, %s750_s9  ;;  %p831_p1 = scmp.eq.s32.totalorder %s477_s15, 0 }
   0x9   : > { %p835_p2 = scmp.eq.s32.totalorder %s477_s15, 1  ;;  %p106_p3 = scmp.eq.s32.totalorder %s478_s16, 1 }
   0xa   : > { %s1069_s17 = scalar_select %p831_p1, 1, 0 }
   0xb   : > { %s1070_s18 = scalar_select %p835_p2, 1, 0 }
   0xc   : > { %p841_p4 = por %p831_p1, %p53_p0  ;;  %p479_p5 = scmp.ge.s32.totalorder %s770_s14, 1 }
   0xd   : > { %p846_p6 = por %p106_p3, %p53_p0  ;;  %p113_p7 = scmp.lt.s32.totalorder %s770_s14, 3 }
   0xe   : > { %s1071_s19 = scalar_select %p841_p4, 1, 0 }
   0xf   : > { %s1072_s20 = scalar_select %p846_p6, 1, 0 }
  0x10   : > { %p851_p8 = pnand %p479_p5, %p113_p7  ;;  %s772_s22 = smov [#allocation5]  }
  0x11   : > { %s125_s23 = sshll.u32 %s772_s22, 4  ;;  %s31_s25 = sadd.s32 1, %s766_s13  ;;  %s126_s23 = int_to_ptr.vmem [resolvable:$true] %s125_s23 }
  0x12   : > { %s1073_s21 = scalar_select %p851_p8, 1, 0 }
  0x13   : > { %p554_p9 = pneg %p851_p8  ;;  %s626_s28 = scalar_lea.hbm %s1063_s1, 512 }
  0x14   : > { %p627_p12 = scmp.ne.s32.totalorder %s1063_s1, %s626_s28  ;;  %p633_p5 = scmp.lt.u32.totalorder %s626_s28, %s1063_s1 }
  0x15   : > { %p860_p11 = pnand %p554_p9, %p831_p1 }
  0x17   : > { %p628_p13 = pneg %p860_p11 }
  0x19   : > { %p629_p0 = pnand %p628_p13, %p627_p12 }
  0x1b   : > { %p630_p3 = pneg %p629_p0 }
  0x1d   : > { %p635_p7 = pnand %p633_p5, %p630_p3 }
  0x1f   : > { %638 = shalt.err (!%p635_p7)
}
  0x20   : > { %s639_s5 = scalar_lea.vmem %s126_s23, 512  ;;  %p647_p1 = scmp.lt.s32.totalorder %s126_s23, %s126_s23 }
  0x21   : > { %p640_p9 = scmp.ne.s32.totalorder %s126_s23, %s639_s5  ;;  %p648_p4 = scmp.lt.s32.totalorder %s639_s5, %s639_s5 }
  0x23   : > { %p642_p10 = pnand %p640_p9, %p628_p13  ;;  %p649_p8 = por %p648_p4, %p647_p1 }
  0x25   : > { %p643_p6 = pneg %p642_p10 }
  0x27   : > { %p650_p2 = pnand %p649_p8, %p643_p6 }
  0x29   : > { %653 = shalt.err (!%p650_p2)
}
  0x2a   : > { %s773_s6 = smov 128   ;;  %s774_s7 = smov 8  }
  0x2b   : > { %557 = dma.hbm_to_vmem [thread:$0]  (!%p860_p11), %s1063_s1, 512, %s126_s23, [#allocation6], %s773_s6, %s773_s6, %s774_s7  }
  0x2c   : > { %p33_p1 = scmp.ge.s32.totalorder %s31_s25, 2  ;;  %s40_s16 = sadd.s32 1, %s758_s11 }
  0x2d   : > { %p47_p2 = scmp.ne.s32.totalorder %s758_s11, %s754_s10  ;;  %p48_p4 = scmp.eq.s32.totalorder %s770_s14, 0 }
  0x2e   : > { %s1090_s25 = smov (%p33_p1, %s31_s25), 0  ;;  %p1076_p8 = scmp.ne.s32.totalorder %s1070_s18, 0 }
  0x2f   : > { %p890_p6 = por %p48_p4, %p47_p2  ;;  %s35_s26 = ssub.s32 %s766_s13, %s1090_s25 }
  0x30   : > { %p896_p10 = por %p1076_p8, %p47_p2  ;;  %p567_p12 = scmp.lt.s32.totalorder %s770_s14, 2 }
  0x31   : > { %p38_p11 = scmp.eq.s32.totalorder %s35_s26, 0  ;;  %s139_s23 = sand.u32 1, %s758_s11  }
  0x32   : > { %s482_s27 = sshll.u32 %s139_s23, 5  ;;  %s510_s29 = sshll.u32 %s766_s13, 9 }
  0x33   : > { %s905_s28 = scalar_select %p38_p11, %s758_s11, %s40_s16  }
  0x34   : > { %s911_s4 = scalar_lea.hbm %s1062_s0, %s510_s29  ;;  %s143_s18 = scalar_lea.vmem [#allocation2], %s482_s27 }
  0x35   : > { %s152_s5 = sshll.u32 %s143_s18, 4  ;;  %p917_p13 = pnand %p567_p12, %p890_p6  ;;  %s913_s5 = int_to_ptr.vmem [resolvable:$true] %s152_s5 }
  0x36   : > { %s921_s15 = scalar_lea.sflag [#allocation3], %s139_s23  ;;  %s654_s16 = scalar_lea.hbm %s911_s4, 512 }
  0x37   : > { %p655_p0 = scmp.ne.s32.totalorder %s911_s4, %s654_s16  ;;  %p656_p3 = pneg %p917_p13 }
  0x38   : > { %s659_s22 = scalar_lea.hbm %s1062_s0, 1024  ;;  %p660_p9 = scmp.lt.u32.totalorder %s911_s4, %s1062_s0 }
  0x39   : > { %p657_p5 = pnand %p656_p3, %p655_p0  ;;  %p661_p1 = scmp.lt.u32.totalorder %s659_s22, %s654_s16 }
  0x3a   : > { %p663_p4 = scmp.lt.u32.totalorder %s654_s16, %s911_s4 }
  0x3b   : > { %p658_p7 = pneg %p657_p5  ;;  %p662_p2 = por %p661_p1, %p660_p9 }
  0x3d   : > { %p664_p6 = por %p663_p4, %p662_p2 }
  0x3f   : > { %p665_p8 = pnand %p664_p6, %p658_p7 }
  0x41   : > { %668 = shalt.err (!%p665_p8)
}
  0x42   : > { %s669_s23 = scalar_lea.vmem %s913_s5, 512  ;;  %s775_s3 = smov [#allocation2]  }
  0x43   : > { %p670_p12 = scmp.ne.s32.totalorder %s913_s5, %s669_s23  ;;  %s674_s18 = sshll.u32 %s775_s3, 4  ;;  %s675_s18 = int_to_ptr.vmem [resolvable:$false] %s674_s18 }
  0x44   : > { %s676_s26 = scalar_lea.vmem %s675_s18, 1024  ;;  %p677_p5 = scmp.lt.s32.totalorder %s913_s5, %s675_s18 }
  0x45   : > { %p672_p11 = pnand %p670_p12, %p656_p3  ;;  %p678_p9 = scmp.lt.s32.totalorder %s676_s26, %s669_s23 }
  0x47   : > { %p673_p0 = pneg %p672_p11  ;;  %p679_p1 = por %p678_p9, %p677_p5 }
  0x49   : > { %p680_p2 = pnand %p679_p1, %p673_p0 }
  0x4b   : > { %683 = shalt.err (!%p680_p2)
}
  0x4c   : > { %561 = dma.hbm_to_vmem [thread:$0]  (!%p917_p13), %s911_s4, 512, %s913_s5, %s921_s15, %s773_s6, %s773_s6, %s774_s7  }
  0x4d   : > { %p1079_p3 = scmp.ne.s32.totalorder %s1073_s21, 0 }
  0x4e   : > { %s955_s16 = sand.u32 (!%p1079_p3), 1, %s754_s10   ;;  %p1080_p7 = scmp.ne.s32.totalorder (!%p1079_p3), %s1071_s19, 0 }
  0x4f   : > { %164 = sbr.rel (%p1079_p3) target bundleno = 464 (0x1d0), region = 28  ;;  %s486_s27 = sshll.u32 (!%p1079_p3), %s955_s16, 5 }
  0x50   : > { %s167_s22 = scalar_lea.sflag (!%p1079_p3), [#allocation3], %s955_s16  ;;  %s170_s29 = scalar_lea.vmem (!%p1079_p3), [#allocation2], %s486_s27 }
  0x56   : > { %737 = dma.done.wait (%p1080_p7), %s167_s22, 512  }
  0x57   : > { %739 = vsyncadd (%p1080_p7), %s167_s22, 4294966784  ;;  %p1081_p4 = scmp.ne.s32.totalorder %s1069_s17, 0 }
  0x59   : > { %741 = dma.done.wait (%p1081_p4), [#allocation6], 512  }
  0x5a   : > { %743 = vsyncadd (%p1081_p4), [#allocation6], 4294966784  ;;  %vm205_vm0 = vcmask 261120   ;;  %v201_v0 = vld [vmem:[#allocation5] sm:$0xff]  ;;  %v202_v1 = vld [vmem:[#allocation5 + $0x8] sm:$0xff]  ;;  %s488_s17 = sshll.u32 %s955_s16, 7 }
  0x5b   : > { %v203_v2 = vld [vmem:[#allocation5 + $0x10] sm:$0xff]  ;;  %v534_v3 = vpack.c.bf16 %v202_v1, %v201_v0  ;;  %v204_v4 = vld [vmem:[#allocation5 + $0x18] sm:$0xff]  ;;  %v197_v5 = vld [vmem:[%s170_s29] sm:$0xff]  ;;  %vm303_vm1 = vcmask 64512   ;;  %s972_s19 = scalar_lea.vmem [#allocation7], %s488_s17  ;;  %s776_s21 = smov 120  }
  0x5c   : > { %v199_v6 = vld [vmem:[%s170_s29 + $0x10] sm:$0xff]  ;;  %v538_v7 = vpack.c.bf16 %v204_v4, %v203_v2  ;;  %528 = vmatprep.mubr.msk.f32.mxu0 %vm205_vm0, %v197_v5  ;;  %v198_v8 = vld [vmem:[%s170_s29 + $0x8] sm:$0xff]  ;;  %v200_v9 = vld [vmem:[%s170_s29 + $0x18] sm:$0xff]  ;;  %s777_s6 = smov 112   ;;  %s778_s7 = smov 104  }
  0x5d   : > { %531 = vmatprep.mubr.msk.f32.mxu1 %vm205_vm0, %v199_v6  ;;  %535 = vmatprep.subr.bf16.mxu0 %v534_v3  ;;  %s511_s4 = sshll.u32 %s762_s12, 11  ;;  %s380_s5 = sshll.u32 %s972_s19, 4  ;;  %s1009_s5 = int_to_ptr.vmem [resolvable:$true] %s380_s5 }
  0x5e   : > { %542 = vmatprep.subr.bf16.mxu1 %v534_v3  ;;  %537 = vmatpush3.bf16.msra.mxu0 %v534_v3  ;;  %s1007_s30 = scalar_lea.hbm %s1064_s2, %s511_s4  ;;  %s364_s12 = scalar_lea.sflag [#allocation4], %s955_s16 }
  0x5f   : > { %544 = vmatpush3.bf16.msra.mxu1 %v534_v3  ;;  %539 = vmatprep.subr.bf16.mxu0 %v538_v7  ;;  %s684_s23 = scalar_lea.vmem %s1009_s5, 2048  ;;  %s779_s3 = smov [#allocation7]  }
  0x60   : > { %543 = vmatprep.subr.bf16.mxu1 %v538_v7  ;;  %p685_p13 = scmp.ne.s32.totalorder %s1009_s5, %s684_s23  ;;  %s688_s18 = sshll.u32 %s779_s3, 4  ;;  %s689_s18 = int_to_ptr.vmem [resolvable:$false] %s688_s18 }
  0x61   : > { %s690_s26 = scalar_lea.vmem %s689_s18, 4096  ;;  %p691_p12 = scmp.lt.s32.totalorder %s1009_s5, %s689_s18 }
  0x62   : > { %541 = vmatpush3.bf16.msra.mxu0 %v538_v7  ;;  %p686_p6 = pnand %p685_p13, %p896_p10  ;;  %p692_p11 = scmp.lt.s32.totalorder %s690_s26, %s684_s23 }
  0x63   : > { %545 = vmatpush3.bf16.msra.mxu1 %v538_v7 }
  0x64   : > { %p687_p8 = pneg %p686_p6  ;;  %p693_p0 = por %p692_p11, %p691_p12 }
  0x65   : > { %529 = vmatmul.mubr.msk.f32.vlgmr.msra.gmra.mrb[0].mxu0 %vm205_vm0, %v198_v8 }
  0x66   : > { %532 = vmatmul.mubr.msk.f32.vlgmr.msra.gmra.mrb[0].mxu1 %vm205_vm0, %v200_v9  ;;  %p694_p5 = pnand %p693_p0, %p687_p8 }
 0x138   : > { %v530_v10 = vpop.f32.mrb[0].mxu0 }
 0x139   : > { %v533_v11 = vpop.f32.mrb[0].mxu1  ;;  %305 = vst.msk [vmem:[%s972_s19 + $0x20] sm:$0xff] %vm303_vm1, %v530_v10  ;;  %314 = vrot.lane.b32.xlu0 %v530_v10, %s776_s21  ;;  %v284_v13 = vpop.f32.mrb[1].mxu0 }
 0x13a   : > { %307 = vst.msk [vmem:[%s972_s19 + $0x60] sm:$0xff] %vm303_vm1, %v533_v11  ;;  %318 = vrot.lane.b32.xlu1 %v533_v11, %s776_s21  ;;  %v294_v12 = vpop.f32.mrb[1].mxu1  ;;  %304 = vst.msk [vmem:[%s972_s19] sm:$0xff] %vm303_vm1, %v284_v13 }
 0x13b   : > { %306 = vst.msk [vmem:[%s972_s19 + $0x40] sm:$0xff] %vm303_vm1, %v294_v12 }
 0x13d   : > { %312 = vrot.lane.b32.xlu0 %v284_v13, %s776_s21 }
 0x13e   : > { %331 = vrot.lane.b32.xlu1 %v530_v10, %s777_s6 }
 0x141   : > { %329 = vrot.lane.b32.xlu0 %v284_v13, %s777_s6 }
 0x142   : > { %335 = vrot.lane.b32.xlu1 %v533_v11, %s777_s6 }
 0x145   : > { %333 = vrot.lane.b32.xlu0 %v294_v12, %s777_s6 }
 0x146   : > { %348 = vrot.lane.b32.xlu1 %v530_v10, %s778_s7 }
 0x149   : > { %346 = vrot.lane.b32.xlu0 %v284_v13, %s778_s7 }
 0x14a   : > { %316 = vrot.lane.b32.xlu1 %v294_v12, %s776_s21 }
 0x14d   : > { %350 = vrot.lane.b32.xlu0 %v294_v12, %s778_s7 }
 0x14e   : > { %352 = vrot.lane.b32.xlu1 %v533_v11, %s778_s7 }
 0x1ab   : > { %v315_v15 = vpop.permute.xlu0 %314 }
 0x1ac   : > { %v319_v14 = vpop.permute.xlu1 %318  ;;  %494 = vst.msk [vmem:[%s972_s19 + $0x28] sm:$0xff] %vm303_vm1, %v315_v15 }
 0x1ad   : > { %496 = vst.msk [vmem:[%s972_s19 + $0x68] sm:$0xff] %vm303_vm1, %v319_v14 }
 0x1af   : > { %v313_v17 = vpop.permute.xlu0 %312 }
 0x1b0   : > { %v332_v16 = vpop.permute.xlu1 %331  ;;  %493 = vst.msk [vmem:[%s972_s19 + $0x8] sm:$0xff] %vm303_vm1, %v313_v17 }
 0x1b1   : > { %498 = vst.msk [vmem:[%s972_s19 + $0x30] sm:$0xff] %vm303_vm1, %v332_v16 }
 0x1b3   : > { %v330_v19 = vpop.permute.xlu0 %329 }
 0x1b4   : > { %v336_v18 = vpop.permute.xlu1 %335  ;;  %497 = vst.msk [vmem:[%s972_s19 + $0x10] sm:$0xff] %vm303_vm1, %v330_v19 }
 0x1b5   : > { %500 = vst.msk [vmem:[%s972_s19 + $0x70] sm:$0xff] %vm303_vm1, %v336_v18 }
 0x1b7   : > { %v334_v21 = vpop.permute.xlu0 %333 }
 0x1b8   : > { %v349_v20 = vpop.permute.xlu1 %348  ;;  %499 = vst.msk [vmem:[%s972_s19 + $0x50] sm:$0xff] %vm303_vm1, %v334_v21 }
 0x1b9   : > { %502 = vst.msk [vmem:[%s972_s19 + $0x38] sm:$0xff] %vm303_vm1, %v349_v20 }
 0x1bb   : > { %v347_v23 = vpop.permute.xlu0 %346 }
 0x1bc   : > { %v317_v22 = vpop.permute.xlu1 %316  ;;  %501 = vst.msk [vmem:[%s972_s19 + $0x18] sm:$0xff] %vm303_vm1, %v347_v23 }
 0x1bd   : > { %495 = vst.msk [vmem:[%s972_s19 + $0x48] sm:$0xff] %vm303_vm1, %v317_v22 }
 0x1bf   : > { %v351_v25 = vpop.permute.xlu0 %350 }
 0x1c0   : > { %v353_v24 = vpop.permute.xlu1 %352  ;;  %503 = vst.msk [vmem:[%s972_s19 + $0x58] sm:$0xff] %vm303_vm1, %v351_v25 }
 0x1c1   : > { %504 = vst.msk [vmem:[%s972_s19 + $0x78] sm:$0xff] %vm303_vm1, %v353_v24 }
 0x1c2   : > { %697 = shalt.err (!%p694_p5)
}
 0x1c3   : > { %s698_s27 = scalar_lea.hbm %s1007_s30, 2048  ;;  %s702_s17 = scalar_lea.hbm %s1064_s2, 4096 }
 0x1c4   : > { %p699_p9 = scmp.ne.s32.totalorder %s1007_s30, %s698_s27  ;;  %p703_p3 = scmp.lt.u32.totalorder %s1007_s30, %s1064_s2 }
 0x1c5   : > { %p704_p7 = scmp.lt.u32.totalorder %s702_s17, %s698_s27  ;;  %p706_p13 = scmp.lt.u32.totalorder %s698_s27, %s1007_s30 }
 0x1c6   : > { %p700_p1 = pnand %p699_p9, %p896_p10 }
 0x1c7   : > { %p705_p4 = por %p704_p7, %p703_p3 }
 0x1c8   : > { %p701_p2 = pneg %p700_p1 }
 0x1c9   : > { %p707_p6 = por %p706_p13, %p705_p4 }
 0x1cb   : > { %p708_p8 = pnand %p707_p6, %p701_p2 }
 0x1cd   : > { %711 = shalt.err (!%p708_p8)
}
 0x1ce   : > { %s780_s6 = smov 128   ;;  %s781_s7 = smov 8  }
 0x1cf   : > { %552 = dma.vmem_to_hbm [thread:$0]  (%p896_p10), %s1009_s5, 2048, %s1007_s30, %s364_s12, %s780_s6, %s780_s6, %s781_s7  }
 0x1d0 PF: > { %s395_s4 = sand.u32 1, %s750_s9   ;;  %p1082_p12 = scmp.ne.s32.totalorder %s1072_s20, 0 }
 0x1d1   : > { %p1083_p11 = scmp.ge.s32.totalorder %s770_s14, 2  ;;  %s396_s8 = scalar_lea.sflag [#allocation4], %s395_s4 }
 0x1d3   : > { %p563_p0 = pnand %p1083_p11, %p1082_p12 }
 0x1d5   : > { %745 = dma.done.wait (!%p563_p0), %s396_s8, 2048  }
 0x1d6   : > { %747 = vsyncadd (!%p563_p0), %s396_s8, 4294965248  ;;  %s19_s14 = sadd.s32 1, %s770_s14   ;;  %s1084_s9 = smov %s754_s10 }
 0x1d7   : > { %p16_p5 = scmp.ge.s32.totalorder %s19_s14, 4   ;;  %s1085_s10 = smov %s758_s11 }
 0x1d8   : > { %s1086_s11 = smov %s905_s28  ;;  %s1087_s12 = smov %s766_s13 }
 0x1d9   : > { %s1088_s13 = smov %s1090_s25  ;;  %18 = sbr.rel (!%p16_p5) target bundleno = 7 (0x7), region = 80 }
 0x1e0   :  { %401 = vsyncpa [#allocation3], 1 }
 0x1e1   :  { %403 = vsyncpa [#allocation3 + $0x1], 1 }
 0x1e2   :  { %404 = vsyncpa [#allocation6], 1 }
 0x1e3   :  { %405 = vsyncpa [#allocation4], 1 }
 0x1e4   :  { %407 = vsyncpa [#allocation4 + $0x1], 1 }

</bundles_post_ra>
